<compile_context>
chip_gen: v5e
topology: v5e:2x2
jax: 0.10.0
libtpu: 0.0.40
codegen_flags: <defaults>
</compile_context>

<pallas_src>
import functools
import math

import jax
import jax.numpy as jnp
from jax.experimental import pallas as pl
from jax.experimental.pallas import tpu as pltpu

NORM_EPS = 1e-12  # matches F.normalize(eps=1e-12): x / max(||x||, eps)


def _round_up(x, m):
    return ((x + m - 1) // m) * m


def _pick_col_tile(c):
    for t in (2048, 1024, 512, 256, 128):
        if c % t == 0:
            return t
    return c  # full width (block == full dim is always legal)


# --------------------------------------------------------------------------- #
# Kernel 1 (tiny pre-pass): L2-normalize the classifier weight per class,
# transpose in-kernel to (D, C), and emit it in the MXU dtype (bf16 default).
# --------------------------------------------------------------------------- #
def _normalize_weight_kernel(w_ref, out_ref):
    w = w_ref[...].astype(jnp.float32)                               # (tc, D)
    sumsq = jnp.sum(w * w, axis=-1, keepdims=True)                   # (tc, 1)
    wn = w * jax.lax.rsqrt(jnp.maximum(sumsq, NORM_EPS * NORM_EPS))  # (tc, D)
    out_ref[...] = jnp.transpose(wn).astype(out_ref.dtype)           # (D, tc)


def _normalize_weight(weight, mxu_dtype):
    C, D = weight.shape
    tc = _pick_col_tile(C)
    return pl.pallas_call(
        _normalize_weight_kernel,
        out_shape=jax.ShapeDtypeStruct((D, C), mxu_dtype),
        grid_spec=pltpu.PrefetchScalarGridSpec(
            num_scalar_prefetch=0,
            grid=(C // tc,),
            in_specs=[pl.BlockSpec((tc, D), lambda j: (j, 0))],
            out_specs=pl.BlockSpec((D, tc), lambda j: (0, j)),
        ),
        compiler_params=pltpu.CompilerParams(
            dimension_semantics=("parallel",)),
    )(weight)


# --------------------------------------------------------------------------- #
# Kernel 2 (fused ArcFace): per batch-row tile.
#   - f32 row normalization, bf16 MXU matmul
#   - margin applied only at the target column (target cosine gathered via
#     one_hot select + row-sum, all width-C transcendental work removed)
#   - cross-entropy pieces (logsumexp - target logit) per row
# --------------------------------------------------------------------------- #
def _arcface_kernel(x_ref, wn_ref, lab_ref, logit_ref, loss_ref, *,
                    cos_m, sin_m, th, mm, scale):
    x = x_ref[...].astype(jnp.float32)                               # (tr, D)

    # F.normalize(input): x / max(||x||, eps) == x * rsqrt(max(sumsq, eps^2))
    sumsq = jnp.sum(x * x, axis=-1, keepdims=True)
    xn = x * jax.lax.rsqrt(jnp.maximum(sumsq, NORM_EPS * NORM_EPS))

    # bf16 (default) MXU matmul; weight is already normalized + in MXU dtype.
    cosine = jnp.dot(xn.astype(wn_ref.dtype), wn_ref[...],
                     preferred_element_type=jnp.float32)             # (tr, C)

    # one_hot via iota == label (replaces scatter_)
    labels = lab_ref[...]                                            # (tr, 1)
    col = jax.lax.broadcasted_iota(jnp.int32, cosine.shape, 1)       # (tr, C)
    one_hot = col == labels

    # Margin only where it is used: the target column.
    tgt_cos = jnp.sum(jnp.where(one_hot, cosine, 0.0),
                      axis=-1, keepdims=True)                        # (tr, 1)
    # clamp under the sqrt: |cosine| can exceed 1 by rounding (PyTorch would NaN)
    sine = jnp.sqrt(jnp.maximum(1.0 - tgt_cos * tgt_cos, 0.0))
    phi = tgt_cos * cos_m - sine * sin_m
    phi = jnp.where(tgt_cos > th, phi, tgt_cos - mm)                 # (tr, 1)

    logit = jnp.where(one_hot, phi, cosine) * scale                  # (tr, C)
    logit_ref[...] = logit.astype(logit_ref.dtype)

    # cross-entropy pieces (mean over batch happens in the wrapper);
    # the target logit is exactly scale*phi (post-margin), consistent with logit.
    row_max = jnp.max(logit, axis=-1, keepdims=True)
    lse = row_max + jnp.log(jnp.sum(jnp.exp(logit - row_max),
                                    axis=-1, keepdims=True))
    loss_ref[...] = (lse - phi * scale).astype(loss_ref.dtype)


# --------------------------------------------------------------------------- #
# Public wrapper — same semantics as ArcFace.forward(input, label).
# --------------------------------------------------------------------------- #
def arcface_forward(x, weight, labels, *, scale_factor=64.0, margin=0.5,
                    row_tile=256, mxu_dtype=jnp.bfloat16):
    """x: (B, D), weight: (C, D), labels: (B,) int. Returns (loss, logit)."""
    B, D = x.shape
    C, D2 = weight.shape
    assert D == D2

    cos_m = math.cos(margin)
    sin_m = math.sin(margin)
    th = math.cos(math.pi - margin)
    mm = math.sin(math.pi - margin) * margin

    # ---- pre-pass: normalized, transposed weight (D, C) in MXU dtype ------ #
    wn = _normalize_weight(weight, mxu_dtype)
    w_bytes = jnp.dtype(mxu_dtype).itemsize

    # ---- row tile selection ------------------------------------------------ #
    tr = min(_round_up(row_tile, 8), _round_up(B, 8))
    # >= 2 grid steps so both v7x TensorCores get work (harmless on v5e/v6e)
    while tr > 8 and pl.cdiv(B, tr) < 2:
        tr = _round_up(max(tr // 2, 8), 8)

    def _vmem_need(t):
        w = 2 * D * C * w_bytes            # resident weight (2 pipeline bufs)
        xin = 2 * t * D * 4                # input tiles (double-buffered)
        small = 2 * 2 * t * 128 * 4        # labels + per-row loss (lane-padded)
        logits = 2 * t * C * 4             # logit output tiles
        return w + xin + small + logits

    VMEM_BUDGET = 40 * 1024 * 1024         # conservative across v5e/v6e/v7x
    while tr > 8 and _vmem_need(tr) > VMEM_BUDGET:
        tr = _round_up(max(tr // 2, 8), 8)
    # TODO(synk): if the weight alone still exceeds the budget (very large C),
    # tile the class axis with an online logsumexp instead.

    vmem_limit = int(min(64 * 1024 * 1024,
                         max(32 * 1024 * 1024,
                             _vmem_need(tr) * 3 // 2 + (8 << 20))))

    labels2d = labels.astype(jnp.int32).reshape(B, 1)
    grid = (pl.cdiv(B, tr),)

    kernel = functools.partial(
        _arcface_kernel, cos_m=cos_m, sin_m=sin_m, th=th, mm=mm,
        scale=scale_factor)

    logit, loss_rows = pl.pallas_call(
        kernel,
        out_shape=(jax.ShapeDtypeStruct((B, C), jnp.float32),
                   jax.ShapeDtypeStruct((B, 1), jnp.float32)),
        grid_spec=pltpu.PrefetchScalarGridSpec(
            num_scalar_prefetch=0,
            grid=grid,
            in_specs=[
                pl.BlockSpec((tr, D), lambda i: (i, 0)),    # input rows
                pl.BlockSpec((D, C), lambda i: (0, 0)),     # resident weight
                pl.BlockSpec((tr, 1), lambda i: (i, 0)),    # labels
            ],
            out_specs=[
                pl.BlockSpec((tr, C), lambda i: (i, 0)),    # logits
                pl.BlockSpec((tr, 1), lambda i: (i, 0)),    # per-row CE
            ],
        ),
        compiler_params=pltpu.CompilerParams(
            dimension_semantics=("parallel",),
            vmem_limit_bytes=vmem_limit),
    )(x, wn, labels2d)

    loss = jnp.mean(loss_rows)   # exactly (B,1) rows — no padding to slice away
    return loss, logit


# --------------------------------------------------------------------------- #
if __name__ == "__main__":
    key = jax.random.PRNGKey(0)
    # small but lane-dense shapes: batch=20 (exercises the ragged last tile),
    # in_features=128, out_features (classes)=256
    B, D, C = 20, 128, 256
    kx, kw, kl = jax.random.split(key, 3)

    x = jax.random.normal(kx, (B, D), jnp.float32)
    # xavier-uniform-like init for the classifier weight (C, D), PyTorch layout
    limit = math.sqrt(6.0 / (D + C))
    weight = jax.random.uniform(kw, (C, D), jnp.float32, -limit, limit)
    labels = jax.random.randint(kl, (B,), 0, C, jnp.int32)

    loss, logit = arcface_forward(x, weight, labels,
                                  scale_factor=64.0, margin=0.5)
    loss = jax.block_until_ready(loss)
    logit = jax.block_until_ready(logit)

    assert logit.shape == (B, C)
    assert loss.shape == ()
    assert bool(jnp.isfinite(loss))
    assert bool(jnp.all(jnp.isfinite(logit)))
    print("KERNEL_OK")
</pallas_src>

<mosaic_0001>
module attributes {stable_mosaic.version = 11 : i64} {
  func.func @_normalize_weight_kernel(%arg0: i32, %arg1: memref<256x128xf32, #tpu.memory_space<vmem>>, %arg2: memref<128x256xbf16, #tpu.memory_space<vmem>>) attributes {dimension_semantics = [#tpu.dimension_semantics<parallel>], iteration_bounds = array<i64: 1>, scalar_prefetch = 0 : i64, scratch_operands = 0 : i64, tpu.core_type = #tpu.core_type<tc>, window_params = [{transform_indices = @transform_0, window_bounds = array<i64: 256, 128>}, {transform_indices = @transform_1, window_bounds = array<i64: 128, 256>}]} {
    %c0 = arith.constant 0 : index
    %c0_0 = arith.constant 0 : index
    %0 = vector.load %arg1[%c0, %c0_0] : memref<256x128xf32, #tpu.memory_space<vmem>>, vector<256x128xf32>
    %1 = arith.mulf %0, %0 : vector<256x128xf32>
    %cst = arith.constant dense<0.000000e+00> : vector<256xf32>
    %2 = vector.multi_reduction <add>, %1, %cst [1] : vector<256x128xf32> to vector<256xf32>
    %3 = vector.shape_cast %2 : vector<256xf32> to vector<256x1xf32>
    %cst_1 = arith.constant 1.000000e-24 : f32
    %4 = vector.broadcast %cst_1 : f32 to vector<256x1xf32>
    %5 = arith.maximumf %3, %4 : vector<256x1xf32>
    %6 = math.rsqrt %5 : vector<256x1xf32>
    %7 = vector.broadcast %6 : vector<256x1xf32> to vector<256x128xf32>
    %8 = arith.mulf %0, %7 : vector<256x128xf32>
    %9 = tpu.transpose %8, [1, 0] : vector<256x128xf32> -> vector<128x256xf32>
    %10 = arith.truncf %9 : vector<128x256xf32> to vector<128x256xbf16>
    %c0_2 = arith.constant 0 : index
    %c0_3 = arith.constant 0 : index
    %11 = vector.load %arg2[%c0_2, %c0_3] : memref<128x256xbf16, #tpu.memory_space<vmem>>, vector<128x256xbf16>
    tpu.vector_store %arg2[%c0_2, %c0_3], %10 {strides = array<i32>} : memref<128x256xbf16, #tpu.memory_space<vmem>>, vector<128x256xbf16>,
    return
  }
  func.func @transform_0(%arg0: i32) -> (i32, i32) {
    %c0_i32 = arith.constant 0 : i32
    %c0_i32_0 = arith.constant 0 : i32
    return %arg0, %c0_i32 : i32, i32
  }
  func.func @transform_1(%arg0: i32) -> (i32, i32) {
    %c0_i32 = arith.constant 0 : i32
    %c0_i32_0 = arith.constant 0 : i32
    return %c0_i32, %arg0 : i32, i32
  }
}

</mosaic_0001>

<bundles_post_ra>
// kernel: tpu_custom_call.1
= control target key start
LH: loop header
LB: loop body
LE: loop exit
PB: predicated region body
PF: predicated region fallthrough
CT: control target
= control target key end

     0   :  { %6 = vsyncpa [#allocation3], 0  ;;  %s1594_s0 = inlined_call_operand.hbm [shape: f32[256,128], index: 0, kind: input, shape index: {}]   ;;  %s1595_s1 = inlined_call_operand.hbm [shape: bf16[128,256], index: 1, kind: output, shape index: {}]  }
   0x1   :  { %7 = vsyncpa [#allocation4], 0  ;;  %s12_s8 = sshll.u32 %s1594_s0, 4  ;;  %s884_s9 = smov [#allocation2]   ;;  %s13_s8 = int_to_ptr.hbm [resolvable:$true] %s12_s8 }
   0x2   :  { %s14_s10 = sshll.u32 %s884_s9, 4  ;;  %s885_s11 = smov 128   ;;  %s15_s10 = int_to_ptr.vmem [resolvable:$true] %s14_s10 }
   0x3   :  { %s886_s12 = smov 8  }
   0x4   :  { %20 = dma.hbm_to_vmem [thread:$0]  %s13_s8, 4096, %s15_s10, [#allocation3], %s885_s11, %s885_s11, %s886_s12  }
   0x5   :  { %880 = dma.done.wait [#allocation3], 4096  }
   0x6   :  { %881 = vsyncadd [#allocation3], 4294963200  ;;  %v904_v0 = vld [vmem:[#allocation2 + $0x20] sm:$0xff]  ;;  %v906_v1 = vld [vmem:[#allocation2 + $0x10] sm:$0xff]  ;;  %s887_s0 = smov [#allocation5]   ;;  %s639_s16 = sshll.u32 %s1595_s1, 4  ;;  %s640_s16 = int_to_ptr.hbm [resolvable:$true] %s639_s16 }
   0x7   :  { %v908_v2 = vld [vmem:[#allocation2] sm:$0xff]  ;;  %v61_v3 = vmul.f32 %v904_v0, %v904_v0  ;;  %v59_v4 = vmul.f32 %v906_v1, %v906_v1  ;;  %v916_v6 = vld [vmem:[#allocation2 + $0x28] sm:$0xff]  ;;  %v918_v7 = vld [vmem:[#allocation2 + $0x18] sm:$0xff]  ;;  %s637_s13 = sshll.u32 %s887_s0, 4  ;;  %s638_s13 = int_to_ptr.vmem [resolvable:$true] %s637_s13 }
   0x8   :  { %v57_v5 = vmul.f32 %v908_v2, %v908_v2  ;;  %v920_v8 = vld [vmem:[#allocation2 + $0x8] sm:$0xff]  ;;  %v62_v9 = vmul.f32 %v916_v6, %v916_v6  ;;  %v60_v10 = vmul.f32 %v918_v7, %v918_v7  ;;  %v928_v12 = vld [vmem:[#allocation2 + $0x40] sm:$0xff]  ;;  %v930_v13 = vld [vmem:[#allocation2 + $0x38] sm:$0xff] }
   0x9   :  { %97 = vadd.xlane.f32.xlu2 %v61_v3  ;;  %93 = vadd.xlane.f32.xlu1 %v59_v4  ;;  %v58_v11 = vmul.f32 %v920_v8, %v920_v8  ;;  %v932_v14 = vld [vmem:[#allocation2 + $0x30] sm:$0xff]  ;;  %v65_v15 = vmul.f32 %v928_v12, %v928_v12  ;;  %v64_v16 = vmul.f32 %v930_v13, %v930_v13  ;;  %v940_v18 = vld [vmem:[#allocation2 + $0x80] sm:$0xff]  ;;  %v944_v20 = vld [vmem:[#allocation2 + $0x48] sm:$0xff] }
   0xa   :  { %89 = vadd.xlane.f32.xlu0 %v57_v5  ;;  %v63_v17 = vmul.f32 %v932_v14, %v932_v14  ;;  %v942_v19 = vld [vmem:[#allocation2 + $0x50] sm:$0xff]  ;;  %v73_v21 = vmul.f32 %v940_v18, %v940_v18  ;;  %v66_v23 = vmul.f32 %v944_v20, %v944_v20  ;;  %v952_v24 = vld [vmem:[#allocation2 + $0x98] sm:$0xff]  ;;  %v956_v26 = vld [vmem:[#allocation2 + $0x88] sm:$0xff] }
   0xb   :  { %v67_v22 = vmul.f32 %v942_v19, %v942_v19  ;;  %v954_v25 = vld [vmem:[#allocation2 + $0x90] sm:$0xff]  ;;  %v76_v27 = vmul.f32 %v952_v24, %v952_v24  ;;  %v74_v29 = vmul.f32 %v956_v26, %v956_v26  ;;  %v966_v31 = vld [vmem:[#allocation2 + $0xa8] sm:$0xff]  ;;  %v968_v32 = vld [vmem:[#allocation2 + $0xa0] sm:$0xff] }
   0xc   :  { %v75_v28 = vmul.f32 %v954_v25, %v954_v25  ;;  %v964_v30 = vld [vmem:[#allocation2 + $0xb0] sm:$0xff]  ;;  %v78_v34 = vmul.f32 %v966_v31, %v966_v31  ;;  %v77_v35 = vmul.f32 %v968_v32, %v968_v32  ;;  %v976_v36 = vld [vmem:[#allocation2 + $0xc8] sm:$0xff]  ;;  %v978_v37 = vld [vmem:[#allocation2 + $0xc0] sm:$0xff] }
   0xd   :  { %v79_v33 = vmul.f32 %v964_v30, %v964_v30  ;;  %v980_v38 = vld [vmem:[#allocation2 + $0xb8] sm:$0xff]  ;;  %v82_v39 = vmul.f32 %v976_v36, %v976_v36  ;;  %v81_v40 = vmul.f32 %v978_v37, %v978_v37  ;;  %v992_v44 = vld [vmem:[#allocation2 + $0xd0] sm:$0xff]  ;;  %v1000_v48 = vld [vmem:[#allocation2 + $0x68] sm:$0xff] }
   0xe   :  { %v80_v41 = vmul.f32 %v980_v38, %v980_v38  ;;  %v988_v42 = vld [vmem:[#allocation2 + $0xd8] sm:$0xff]  ;;  %v83_v47 = vmul.f32 %v992_v44, %v992_v44  ;;  %v1002_v49 = vld [vmem:[#allocation2 + $0xe0] sm:$0xff]  ;;  %v70_v51 = vmul.f32 %v1000_v48, %v1000_v48  ;;  %v1012_v54 = vld [vmem:[#allocation2 + $0xf0] sm:$0xff] }
   0xf   :  { %v990_v43 = vld [vmem:[#allocation2 + $0x58] sm:$0xff]  ;;  %v84_v45 = vmul.f32 %v988_v42, %v988_v42  ;;  %v1004_v50 = vld [vmem:[#allocation2 + $0x60] sm:$0xff]  ;;  %v85_v52 = vmul.f32 %v1002_v49, %v1002_v49  ;;  %1600 = vst [vmem:[#allocation8_spill] sm:$0xff] %v1012_v54  ;;  %v1014_v55 = vld [vmem:[#allocation2 + $0x70] sm:$0xff]  ;;  %v87_v57 = vmul.f32 %v1012_v54, %v1012_v54 }
  0x10   :  { %v68_v46 = vmul.f32 %v990_v43, %v990_v43  ;;  %v69_v53 = vmul.f32 %v1004_v50, %v1004_v50  ;;  %1601 = vst [vmem:[#allocation9_spill] sm:$0xff] %v1014_v55  ;;  %v1016_v56 = vld [vmem:[#allocation2 + $0xe8] sm:$0xff]  ;;  %v71_v58 = vmul.f32 %v1014_v55, %v1014_v55  ;;  %v1024_v60 = vld [vmem:[#allocation2 + $0xf8] sm:$0xff] }
  0x11   :  { %99 = vadd.xlane.f32.xlu2 %v62_v9  ;;  %95 = vadd.xlane.f32.xlu1 %v60_v10  ;;  %v86_v59 = vmul.f32 %v1016_v56, %v1016_v56  ;;  %1602 = vst [vmem:[#allocation10_spill] sm:$0xff] %v1024_v60  ;;  %v1026_v61 = vld [vmem:[#allocation2 + $0x78] sm:$0xff]  ;;  %v88_v62 = vmul.f32 %v1024_v60, %v1024_v60 }
  0x12   :  { %91 = vadd.xlane.f32.xlu0 %v58_v11  ;;  %1603 = vst [vmem:[#allocation11_spill] sm:$0xff] %v1026_v61  ;;  %v72_v63 = vmul.f32 %v1026_v61, %v1026_v61 }
  0x19   :  { %105 = vadd.xlane.f32.xlu2 %v65_v15  ;;  %103 = vadd.xlane.f32.xlu1 %v64_v16 }
  0x1a   :  { %101 = vadd.xlane.f32.xlu0 %v63_v17 }
  0x21   :  { %121 = vadd.xlane.f32.xlu2 %v73_v21  ;;  %109 = vadd.xlane.f32.xlu1 %v67_v22 }
  0x22   :  { %107 = vadd.xlane.f32.xlu0 %v66_v23 }
  0x29   :  { %127 = vadd.xlane.f32.xlu2 %v76_v27  ;;  %125 = vadd.xlane.f32.xlu1 %v75_v28 }
  0x2a   :  { %123 = vadd.xlane.f32.xlu0 %v74_v29 }
  0x31   :  { %133 = vadd.xlane.f32.xlu2 %v79_v33  ;;  %131 = vadd.xlane.f32.xlu1 %v78_v34 }
  0x32   :  { %129 = vadd.xlane.f32.xlu0 %v77_v35 }
  0x39   :  { %139 = vadd.xlane.f32.xlu2 %v82_v39  ;;  %137 = vadd.xlane.f32.xlu1 %v81_v40 }
  0x3a   :  { %135 = vadd.xlane.f32.xlu0 %v80_v41 }
  0x41   :  { %143 = vadd.xlane.f32.xlu2 %v84_v45  ;;  %111 = vadd.xlane.f32.xlu1 %v68_v46 }
  0x42   :  { %141 = vadd.xlane.f32.xlu0 %v83_v47 }
  0x49   :  { %115 = vadd.xlane.f32.xlu2 %v70_v51  ;;  %145 = vadd.xlane.f32.xlu1 %v85_v52 }
  0x4a   :  { %113 = vadd.xlane.f32.xlu0 %v69_v53 }
  0x51   :  { %149 = vadd.xlane.f32.xlu2 %v87_v57  ;;  %117 = vadd.xlane.f32.xlu1 %v71_v58 }
  0x52   :  { %147 = vadd.xlane.f32.xlu0 %v86_v59 }
  0x59   :  { %151 = vadd.xlane.f32.xlu1 %v88_v62 }
  0x5a   :  { %119 = vadd.xlane.f32.xlu0 %v72_v63 }
  0x7c   :  { %v98_v3 = vpop.xlane.xlu2 %97  ;;  %v94_v4 = vpop.xlane.xlu1 %93 }
  0x7d   :  { %v90_v5 = vpop.xlane.xlu0 %89  ;;  %v1052_v39 = vmax.f32 %v94_v4, 1e-24 }
  0x7e   :  { %v153_v15 = vmax.f32 %v90_v5, 1e-24 }
  0x7f   :  { %vm211_vm14 = vweird.f32 %v1052_v39 }
  0x80   :  { %768 = vrsqrt.f32 %v153_v15  ;;  %vm191_vm3 = vweird.f32 %v153_v15 }
  0x84   :  { %v1032_v9 = vpop.xlane.xlu2 %99  ;;  %v96_v10 = vpop.xlane.xlu1 %95 }
  0x85   :  { %v92_v11 = vpop.xlane.xlu0 %91  ;;  %v1064_v5 = vmax.f32 %v96_v10, 1e-24  ;;  %v1103_v55 = vmax.f32 %v1032_v9, 1e-24 }
  0x86   :  { %v1040_v22 = vmax.f32 %v92_v11, 1e-24  ;;  %v1045_v28 = vpop.eup %768 }
  0x87   :  { %v186_v34 = vmul.f32 %v1045_v28, %v153_v15  ;;  %vm192_vm1 = vweird.f32 %v1045_v28 }
  0x88   :  { %770 = vrsqrt.f32 %v1040_v22  ;;  %vm1085_vm5 = vmor %vm191_vm3, %vm192_vm1  ;;  %vm201_vm7 = vweird.f32 %v1040_v22 }
  0x89   :  { %v187_v40 = vmul.f32 %v1045_v28, %v186_v34 }
  0x8b   :  { %v188_v57 = vmul.f32 0.5, %v187_v40 }
  0x8c   :  { %v1034_v16 = vpop.xlane.xlu2 %105  ;;  %v1036_v17 = vpop.xlane.xlu1 %103 }
  0x8d   :  { %v1038_v21 = vpop.xlane.xlu0 %101  ;;  %v189_v11 = vsub.f32 1.5, %v188_v57 }
  0x8e   :  { %v1050_v35 = vpop.eup %770 }
  0x8f   :  { %v196_v46 = vmul.f32 %v1050_v35, %v1040_v22  ;;  %vm202_vm6 = vweird.f32 %v1050_v35 }
  0x90   :  { %vm1109_vm8 = vmor %vm201_vm7, %vm202_vm6 }
  0x91   :  { %v197_v59 = vmul.f32 %v1050_v35, %v196_v46 }
  0x93   :  { %v198_v34 = vmul.f32 0.5, %v197_v59 }
  0x94   :  { %v122_v23 = vpop.xlane.xlu2 %121  ;;  %v1043_v27 = vpop.xlane.xlu1 %109 }
  0x95   :  { %v169_v29 = vmax.f32 %v122_v23, 1e-24  ;;  %v1047_v33 = vpop.xlane.xlu0 %107  ;;  %v199_v57 = vsub.f32 1.5, %v198_v34 }
  0x97   :  { %772 = vrsqrt.f32 %v169_v29  ;;  %vm351_vm2 = vweird.f32 %v169_v29  ;;  %v200_v15 = vmul.f32 %v1050_v35, %v199_v57 }
  0x98   :  { %774 = vrsqrt.f32 %v1052_v39 }
  0x99   :  { %v204_v9 = vsel %vm1109_vm8, %v1050_v35, %v200_v15 }
  0x9a   :  { %v506_v35 = vmul.f32 %v204_v9, %v920_v8 }
  0x9c   :  { %v126_v41 = vpop.xlane.xlu1 %125  ;;  %v128_v53 = vpop.xlane.xlu2 %127 }
  0x9d   :  { %v773_v45 = vpop.eup %772  ;;  %v1057_v47 = vmax.f32 %v126_v41, 1e-24  ;;  %v124_v51 = vpop.xlane.xlu0 %123  ;;  %v1061_v62 = vmax.f32 %v128_v53, 1e-24 }
  0x9e   :  { %v346_v52 = vmul.f32 %v773_v45, %v169_v29  ;;  %v170_v63 = vmax.f32 %v124_v51, 1e-24  ;;  %v1066_v23 = vpop.eup %774  ;;  %vm352_vm0 = vweird.f32 %v773_v45  ;;  %v190_v51 = vmul.f32 %v1045_v28, %v189_v11 }
  0x9f   :  { %776 = vrsqrt.f32 %v1057_v47  ;;  %v206_v46 = vmul.f32 %v1066_v23, %v1052_v39  ;;  %vm353_vm4 = vmor %vm351_vm2, %vm352_vm0  ;;  %vm371_vm12 = vweird.f32 %v1057_v47  ;;  %vm212_vm15 = vweird.f32 %v1066_v23 }
  0xa0   :  { %v347_v58 = vmul.f32 %v773_v45, %v346_v52  ;;  %778 = vrsqrt.f32 %v170_v63  ;;  %vm361_vm10 = vweird.f32 %v170_v63  ;;  %vm1155_vm1 = vmor %vm211_vm14, %vm212_vm15  ;;  %vm381_vm2 = vweird.f32 %v1061_v62 }
  0xa1   :  { %780 = vrsqrt.f32 %v1061_v62  ;;  %v207_v34 = vmul.f32 %v1066_v23, %v206_v46 }
  0xa2   :  { %v348_v4 = vmul.f32 0.5, %v347_v58  ;;  %782 = vrsqrt.f32 %v1064_v5 }
  0xa4   :  { %v349_v41 = vsub.f32 1.5, %v348_v4  ;;  %v1080_v4 = vmax.f32 %v98_v3, 1e-24  ;;  %v194_v3 = vsel %vm1085_vm5, %v1045_v28, %v190_v51  ;;  %v208_v51 = vmul.f32 0.5, %v207_v34 }
  0xa5   :  { %v130_v40 = vpop.xlane.xlu0 %129  ;;  %v1069_v52 = vpop.eup %776  ;;  %v505_v28 = vmul.f32 %v194_v3, %v908_v2  ;;  %vm221_vm5 = vweird.f32 %v1064_v5 }
  0xa6   :  { %v366_v10 = vmul.f32 %v1069_v52, %v1057_v47  ;;  %v779_v53 = vpop.eup %778  ;;  %v1078_v58 = vmax.f32 %v130_v40, 1e-24  ;;  %v350_v59 = vmul.f32 %v773_v45, %v349_v41  ;;  %vm372_vm13 = vweird.f32 %v1069_v52 }
  0xa7   :  { %v356_v61 = vmul.f32 %v779_v53, %v170_v63  ;;  %v1083_v54 = vpop.eup %780  ;;  %vm362_vm9 = vweird.f32 %v779_v53  ;;  %vm1140_vm0 = vmor %vm371_vm12, %vm372_vm13  ;;  %vm231_vm12 = vweird.f32 %v1080_v4 }
  0xa8   :  { %v367_v60 = vmul.f32 %v1069_v52, %v366_v10  ;;  %v354_v11 = vsel %vm353_vm4, %v773_v45, %v350_v59  ;;  %v1093_v41 = vpop.eup %782  ;;  %784 = vrsqrt.f32 %v1078_v58  ;;  %v376_v45 = vmul.f32 %v1083_v54, %v1061_v62  ;;  %v132_v10 = vpop.xlane.xlu1 %131  ;;  %vm363_vm11 = vmor %vm361_vm10, %vm362_vm9 }
  0xa9   :  { %v357_v29 = vmul.f32 %v779_v53, %v356_v61  ;;  %v521_v40 = vmul.f32 %v354_v11, %v940_v18  ;;  %786 = vrsqrt.f32 %v1080_v4  ;;  %v216_v57 = vmul.f32 %v1093_v41, %v1064_v5 }
  0xaa   :  { %v368_v61 = vmul.f32 0.5, %v367_v60  ;;  %v1113_v60 = vmax.f32 %v132_v10, 1e-24  ;;  %v377_v22 = vmul.f32 %v1083_v54, %v376_v45  ;;  %788 = vrsqrt.f32 %v1103_v55 }
  0xab   :  { %v358_v46 = vmul.f32 0.5, %v357_v29  ;;  %v656_v11 = vpack.i.bf16 %v521_v40, %v505_v28  ;;  %v217_v40 = vmul.f32 %v1093_v41, %v216_v57  ;;  %vm382_vm3 = vweird.f32 %v1083_v54 }
  0xac   :  { %v369_v2 = vsub.f32 1.5, %v368_v61  ;;  %790 = vrsqrt.f32 %v1113_v60  ;;  %v378_v15 = vmul.f32 0.5, %v377_v22  ;;  %v134_v61 = vpop.xlane.xlu2 %133  ;;  %vm1175_vm4 = vmor %vm381_vm2, %vm382_vm3  ;;  %vm222_vm6 = vweird.f32 %v1093_v41 }
  0xad   :  { %v359_v59 = vsub.f32 1.5, %v358_v46  ;;  %657 = vxpose.xlu2.b32.start [1/16] %v656_v11, 128  ;;  %v209_v46 = vsub.f32 1.5, %v208_v51  ;;  %v218_v8 = vmul.f32 0.5, %v217_v40  ;;  %v1144_v18 = vmax.f32 %v134_v61, 1e-24  ;;  %vm1195_vm7 = vmor %vm221_vm5, %vm222_vm6 }
  0xae   :  { %v1119_v29 = vpop.eup %784  ;;  %v370_v45 = vmul.f32 %v1069_v52, %v369_v2  ;;  %v379_v11 = vsub.f32 1.5, %v378_v15  ;;  %vm391_vm8 = vweird.f32 %v1078_v58  ;;  %vm401_vm14 = vweird.f32 %v1113_v60 }
  0xaf   :  { %v360_v34 = vmul.f32 %v779_v53, %v359_v59  ;;  %v1121_v3 = vpop.eup %786  ;;  %v386_v28 = vmul.f32 %v1119_v29, %v1078_v58  ;;  %v210_v57 = vmul.f32 %v1066_v23, %v209_v46  ;;  %v219_v46 = vsub.f32 1.5, %v218_v8 }
  0xb0   :  { %v1146_v59 = vpop.eup %788  ;;  %v374_v39 = vsel %vm1140_vm0, %v1069_v52, %v370_v45  ;;  %792 = vrsqrt.f32 %v1144_v18  ;;  %vm392_vm9 = vweird.f32 %v1119_v29  ;;  %v138_v47 = vpop.xlane.xlu1 %137  ;;  %vm241_vm2 = vweird.f32 %v1103_v55 }
  0xb1   :  { %v364_v10 = vsel %vm363_vm11, %v779_v53, %v360_v34  ;;  %v226_v53 = vmul.f32 %v1121_v3, %v1080_v4  ;;  %v387_v9 = vmul.f32 %v1119_v29, %v386_v28  ;;  %v1160_v34 = vmax.f32 %v1038_v21, 1e-24  ;;  %vm1212_vm10 = vmor %vm391_vm8, %vm392_vm9 }
  0xb2   :  { %v522_v63 = vmul.f32 %v364_v10, %v956_v26  ;;  %v1152_v22 = vpop.eup %790  ;;  %v214_v52 = vsel %vm1155_vm1, %v1066_v23, %v210_v57  ;;  %v523_v40 = vmul.f32 %v374_v39, %v954_v25  ;;  %v380_v10 = vmul.f32 %v1083_v54, %v379_v11 }
  0xb3   :  { %v227_v2 = vmul.f32 %v1121_v3, %v226_v53  ;;  %v396_v21 = vmul.f32 %v1152_v22, %v1113_v60  ;;  %v236_v62 = vmul.f32 %v1146_v59, %v1103_v55  ;;  %794 = vrsqrt.f32 %v1160_v34 }
  0xb4   :  { %v658_v51 = vpack.i.bf16 %v522_v63, %v506_v35  ;;  %v388_v35 = vmul.f32 0.5, %v387_v9  ;;  %v136_v63 = vpop.xlane.xlu0 %135  ;;  %v507_v23 = vmul.f32 %v214_v52, %v906_v1  ;;  %v220_v25 = vmul.f32 %v1093_v41, %v219_v46 }
  0xb5   :  { %v228_v45 = vmul.f32 0.5, %v227_v2  ;;  %v1183_v61 = vmax.f32 %v136_v63, 1e-24  ;;  %v1186_v53 = vmax.f32 %v1036_v17, 1e-24  ;;  %v384_v1 = vsel %vm1175_vm4, %v1083_v54, %v380_v10 }
  0xb6   :  { %659 = vxpose.xlu2.b32.cont [2/16] %v658_v51, 128  ;;  %v660_v28 = vpack.i.bf16 %v523_v40, %v507_v23  ;;  %v397_v51 = vmul.f32 %v1152_v22, %v396_v21  ;;  %v389_v57 = vsub.f32 1.5, %v388_v35  ;;  %v1192_v8 = vpop.eup %792  ;;  %v237_v26 = vmul.f32 %v1146_v59, %v236_v62 }
  0xb7   :  { %v229_v11 = vsub.f32 1.5, %v228_v45  ;;  %v224_v17 = vsel %vm1195_vm7, %v1093_v41, %v220_v25  ;;  %796 = vrsqrt.f32 %v1183_v61  ;;  %v524_v54 = vmul.f32 %v384_v1, %v952_v24 }
  0xb8   :  { %798 = vrsqrt.f32 %v1186_v53  ;;  %v406_v39 = vmul.f32 %v1192_v8, %v1144_v18  ;;  %v398_v2 = vmul.f32 0.5, %v397_v51  ;;  %v390_v58 = vmul.f32 %v1119_v29, %v389_v57  ;;  %v140_v57 = vpop.xlane.xlu2 %139 }
  0xb9   :  { %v1204_v9 = vpop.eup %794  ;;  %v238_v46 = vmul.f32 0.5, %v237_v26  ;;  %v508_v41 = vmul.f32 %v224_v17, %v918_v7  ;;  %v230_v40 = vmul.f32 %v1121_v3, %v229_v11  ;;  %vm232_vm11 = vweird.f32 %v1121_v3 }
  0xba   :  { %v246_v24 = vmul.f32 %v1204_v9, %v1160_v34  ;;  %v1222_v10 = vmax.f32 %v138_v47, 1e-24  ;;  %v1225_v35 = vmax.f32 %v1034_v16, 1e-24  ;;  %v407_v63 = vmul.f32 %v1192_v8, %v406_v39  ;;  %vm1233_vm13 = vmor %vm231_vm12, %vm232_vm11 }
  0xbb   :  { %v662_v21 = vpack.i.bf16 %v524_v54, %v508_v41  ;;  %v399_v62 = vsub.f32 1.5, %v398_v2  ;;  %v394_v7 = vsel %vm1212_vm10, %v1119_v29, %v390_v58  ;;  %v239_v4 = vsub.f32 1.5, %v238_v46 }
  0xbc   :  { %v247_v16 = vmul.f32 %v1204_v9, %v246_v24  ;;  %vm402_vm15 = vweird.f32 %v1152_v22  ;;  %v234_v29 = vsel %vm1233_vm13, %v1121_v3, %v230_v40  ;;  %800 = vrsqrt.f32 %v1222_v10 }
  0xbd   :  { %v1231_v15 = vpop.eup %796  ;;  %v525_v25 = vmul.f32 %v394_v7, %v968_v32  ;;  %802 = vrsqrt.f32 %v1225_v35  ;;  %v400_v51 = vmul.f32 %v1152_v22, %v399_v62  ;;  %vm1253_vm0 = vmor %vm401_vm14, %vm402_vm15  ;;  %v509_v3 = vmul.f32 %v234_v29, %v904_v0 }
  0xbe   :  { %661 = vxpose.xlu2.b32.cont [3/16] %v660_v28, 128  ;;  %v1237_v45 = vpop.eup %798  ;;  %v408_v28 = vmul.f32 0.5, %v407_v63  ;;  %v416_v1 = vmul.f32 %v1231_v15, %v1183_v61  ;;  %v240_v32 = vmul.f32 %v1146_v59, %v239_v4  ;;  %vm242_vm1 = vweird.f32 %v1146_v59 }
  0xbf   :  { %v256_v60 = vmul.f32 %v1237_v45, %v1186_v53  ;;  %v248_v5 = vmul.f32 0.5, %v247_v16  ;;  %v1261_v11 = vmax.f32 %v140_v57, 1e-24  ;;  %v664_v17 = vpack.i.bf16 %v525_v25, %v509_v3  ;;  %vm1272_vm3 = vmor %vm241_vm2, %vm242_vm1 }
  0xc0   :  { %v1264_v54 = vmax.f32 %v1047_v33, 1e-24  ;;  %v409_v39 = vsub.f32 1.5, %v408_v28  ;;  %v417_v2 = vmul.f32 %v1231_v15, %v416_v1  ;;  %v404_v0 = vsel %vm1253_vm0, %v1152_v22, %v400_v51  ;;  %v144_v57 = vpop.xlane.xlu2 %143 }
  0xc1   :  { %v257_v55 = vmul.f32 %v1237_v45, %v256_v60  ;;  %v249_v33 = vsub.f32 1.5, %v248_v5  ;;  %vm411_vm4 = vweird.f32 %v1144_v18  ;;  %vm412_vm5 = vweird.f32 %v1192_v8 }
  0xc2   :  { %v1270_v58 = vpop.eup %800  ;;  %v244_v22 = vsel %vm1272_vm3, %v1146_v59, %v240_v32  ;;  %804 = vrsqrt.f32 %v1261_v11  ;;  %v526_v52 = vmul.f32 %v404_v0, %v966_v31  ;;  %v410_v41 = vmul.f32 %v1192_v8, %v409_v39  ;;  %vm1292_vm6 = vmor %vm411_vm4, %vm412_vm5 }
  0xc3   :  { %v1277_v46 = vpop.eup %802  ;;  %806 = vrsqrt.f32 %v1264_v54  ;;  %v426_v40 = vmul.f32 %v1270_v58, %v1222_v10  ;;  %v418_v24 = vmul.f32 0.5, %v417_v2  ;;  %v510_v59 = vmul.f32 %v244_v22, %v916_v6 }
  0xc4   :  { %v266_v18 = vmul.f32 %v1277_v46, %v1225_v35  ;;  %v258_v62 = vmul.f32 0.5, %v257_v55  ;;  %v250_v31 = vmul.f32 %v1204_v9, %v249_v33  ;;  %vm252_vm7 = vweird.f32 %v1204_v9 }
  0xc5   :  { %vm251_vm8 = vweird.f32 %v1160_v34  ;;  %v666_v23 = vpack.i.bf16 %v526_v52, %v510_v59  ;;  %v1303_v4 = vmax.f32 %v1043_v27, 1e-24  ;;  %v427_v16 = vmul.f32 %v1270_v58, %v426_v40 }
  0xc6   :  { %663 = vxpose.xlu2.b32.cont [4/16] %v662_v21, 128  ;;  %v142_v21 = vpop.xlane.xlu0 %141  ;;  %v419_v29 = vsub.f32 1.5, %v418_v24  ;;  %v414_v6 = vsel %vm1292_vm6, %v1192_v8, %v410_v41  ;;  %v267_v28 = vmul.f32 %v1277_v46, %v266_v18  ;;  %vm1312_vm9 = vmor %vm251_vm8, %vm252_vm7  ;;  %v259_v27 = vsub.f32 1.5, %v258_v62 }
  0xc7   :  { %v1300_v7 = vmax.f32 %v142_v21, 1e-24  ;;  %vm421_vm10 = vweird.f32 %v1183_v61  ;;  %vm422_vm11 = vweird.f32 %v1231_v15  ;;  %v254_v8 = vsel %vm1312_vm9, %v1204_v9, %v250_v31  ;;  %v112_v61 = vpop.xlane.xlu1 %111 }
  0xc8   :  { %v1309_v25 = vpop.eup %804  ;;  %v527_v1 = vmul.f32 %v414_v6, %v964_v30  ;;  %v428_v26 = vmul.f32 0.5, %v427_v16  ;;  %v420_v3 = vmul.f32 %v1231_v15, %v419_v29  ;;  %v268_v32 = vmul.f32 0.5, %v267_v28  ;;  %vm1331_vm12 = vmor %vm421_vm10, %vm422_vm11 }
  0xc9   :  { %v1316_v34 = vpop.eup %806  ;;  %808 = vrsqrt.f32 %v1300_v7  ;;  %v436_v60 = vmul.f32 %v1309_v25, %v1261_v11  ;;  %v260_v30 = vmul.f32 %v1237_v45, %v259_v27  ;;  %vm261_vm13 = vweird.f32 %v1186_v53  ;;  %v116_v27 = vpop.xlane.xlu2 %115 }
  0xca   :  { %810 = vrsqrt.f32 %v1303_v4  ;;  %v276_v5 = vmul.f32 %v1316_v34, %v1264_v54  ;;  %vm262_vm14 = vweird.f32 %v1237_v45  ;;  %v1339_v39 = vmax.f32 %v144_v57, 1e-24 }
  0xcb   :  { %v1341_v2 = vmax.f32 %v112_v61, 1e-24  ;;  %v437_v47 = vmul.f32 %v1309_v25, %v436_v60  ;;  %v429_v55 = vsub.f32 1.5, %v428_v26  ;;  %v424_v33 = vsel %vm1331_vm12, %v1231_v15, %v420_v3  ;;  %vm1349_vm15 = vmor %vm261_vm13, %vm262_vm14 }
  0xcc   :  { %v277_v53 = vmul.f32 %v1316_v34, %v276_v5  ;;  %vm431_vm0 = vweird.f32 %v1222_v10  ;;  %vm432_vm1 = vweird.f32 %v1270_v58  ;;  %812 = vrsqrt.f32 %v1339_v39 }
  0xcd   :  { %v264_v15 = vsel %vm1349_vm15, %v1237_v45, %v260_v30  ;;  %814 = vrsqrt.f32 %v1341_v2  ;;  %v528_v24 = vmul.f32 %v424_v33, %v980_v38  ;;  %v438_v21 = vmul.f32 0.5, %v437_v47  ;;  %vm1369_vm2 = vmor %vm431_vm0, %vm432_vm1 }
  0xce   :  { %665 = vxpose.xlu2.b32.cont [5/16] %v664_v17, 128  ;;  %v511_v17 = vmul.f32 %v254_v8, %v932_v14  ;;  %v269_v14 = vsub.f32 1.5, %v268_v32  ;;  %v114_v40 = vpop.xlane.xlu0 %113  ;;  %v430_v18 = vmul.f32 %v1270_v58, %v429_v55  ;;  %v278_v59 = vmul.f32 0.5, %v277_v53 }
  0xcf   :  { %v1347_v22 = vpop.eup %808  ;;  %v512_v45 = vmul.f32 %v264_v15, %v930_v13  ;;  %vm272_vm3 = vweird.f32 %v1277_v46  ;;  %v1376_v38 = vmax.f32 %v114_v40, 1e-24  ;;  %vm271_vm4 = vweird.f32 %v1225_v35 }
  0xd0   :  { %v668_v0 = vpack.i.bf16 %v527_v1, %v511_v17  ;;  %v1354_v41 = vpop.eup %810  ;;  %v446_v63 = vmul.f32 %v1347_v22, %v1300_v7  ;;  %v270_v31 = vmul.f32 %v1277_v46, %v269_v14  ;;  %v439_v28 = vsub.f32 1.5, %v438_v21  ;;  %vm1389_vm5 = vmor %vm271_vm4, %vm272_vm3 }
  0xd1   :  { %v286_v10 = vmul.f32 %v1354_v41, %v1303_v4  ;;  %v670_v29 = vpack.i.bf16 %v528_v24, %v512_v45  ;;  %v434_v13 = vsel %vm1369_vm2, %v1270_v58, %v430_v18  ;;  %v279_v60 = vsub.f32 1.5, %v278_v59 }
  0xd2   :  { %v1380_v6 = vpop.eup %812  ;;  %v447_v51 = vmul.f32 %v1347_v22, %v446_v63  ;;  %vm441_vm6 = vweird.f32 %v1261_v11  ;;  %vm442_vm7 = vweird.f32 %v1309_v25  ;;  %816 = vrsqrt.f32 %v1376_v38 }
  0xd3   :  { %v1387_v8 = vpop.eup %814  ;;  %v287_v1 = vmul.f32 %v1354_v41, %v286_v10  ;;  %v274_v35 = vsel %vm1389_vm5, %v1277_v46, %v270_v31  ;;  %v529_v58 = vmul.f32 %v434_v13, %v978_v37  ;;  %v440_v26 = vmul.f32 %v1309_v25, %v439_v28  ;;  %vm1407_vm8 = vmor %vm441_vm6, %vm442_vm7 }
  0xd4   :  { %v448_v3 = vmul.f32 0.5, %v447_v51  ;;  %v456_v61 = vmul.f32 %v1380_v6, %v1339_v39  ;;  %v296_v11 = vmul.f32 %v1387_v8, %v1341_v2  ;;  %v513_v46 = vmul.f32 %v274_v35, %v928_v12 }
  0xd5   :  { %v288_v5 = vmul.f32 0.5, %v287_v1  ;;  %v280_v17 = vmul.f32 %v1316_v34, %v279_v60  ;;  %vm282_vm9 = vweird.f32 %v1316_v34  ;;  %v1414_v37 = vmax.f32 %v116_v27, 1e-24 }
  0xd6   :  { %667 = vxpose.xlu2.b32.cont [6/16] %v666_v23, 128  ;;  %v146_v23 = vpop.xlane.xlu1 %145  ;;  %v148_v32 = vpop.xlane.xlu0 %147  ;;  %vm281_vm10 = vweird.f32 %v1264_v54  ;;  %v449_v55 = vsub.f32 1.5, %v448_v3  ;;  %v457_v33 = vmul.f32 %v1380_v6, %v456_v61  ;;  %v297_v14 = vmul.f32 %v1387_v8, %v296_v11 }
  0xd7   :  { %v1378_v16 = vmax.f32 %v146_v23, 1e-24  ;;  %v1417_v30 = vmax.f32 %v148_v32, 1e-24  ;;  %v444_v12 = vsel %vm1407_vm8, %v1309_v25, %v440_v26  ;;  %v289_v53 = vsub.f32 1.5, %v288_v5  ;;  %vm1428_vm11 = vmor %vm281_vm10, %vm282_vm9  ;;  %v150_v54 = vpop.xlane.xlu2 %149 }
  0xd8   :  { %v1419_v47 = vpop.eup %816  ;;  %vm451_vm12 = vweird.f32 %v1300_v7  ;;  %vm452_vm13 = vweird.f32 %v1347_v22  ;;  %v284_v15 = vsel %vm1428_vm11, %v1316_v34, %v280_v17  ;;  %v530_v21 = vmul.f32 %v444_v12, %v976_v36 }
  0xd9   :  { %818 = vrsqrt.f32 %v1378_v16  ;;  %v306_v25 = vmul.f32 %v1419_v47, %v1376_v38  ;;  %v450_v18 = vmul.f32 %v1347_v22, %v449_v55  ;;  %v458_v7 = vmul.f32 0.5, %v457_v33  ;;  %vm1445_vm14 = vmor %vm451_vm12, %vm452_vm13 }
  0xda   :  { %820 = vrsqrt.f32 %v1414_v37  ;;  %v298_v63 = vmul.f32 0.5, %v297_v14  ;;  %v1449_v34 = vmax.f32 %v150_v54, 1e-24  ;;  %v514_v62 = vmul.f32 %v284_v15, %v944_v20 }
  0xdb   :  { %822 = vrsqrt.f32 %v1417_v30  ;;  %v290_v45 = vmul.f32 %v1354_v41, %v289_v53  ;;  %vm291_vm15 = vweird.f32 %v1303_v4  ;;  %vm292_vm0 = vweird.f32 %v1354_v41 }
  0xdc   :  { %v307_v31 = vmul.f32 %v1419_v47, %v306_v25  ;;  %v674_v23 = vpack.i.bf16 %v530_v21, %v514_v62  ;;  %v459_v28 = vsub.f32 1.5, %v458_v7  ;;  %v299_v51 = vsub.f32 1.5, %v298_v63  ;;  %vm1466_vm1 = vmor %vm291_vm15, %vm292_vm0 }
  0xdd   :  { %v454_v20 = vsel %vm1445_vm14, %v1347_v22, %v450_v18  ;;  %vm461_vm2 = vweird.f32 %v1339_v39  ;;  %vm462_vm3 = vweird.f32 %v1380_v6  ;;  %824 = vrsqrt.f32 %v1449_v34 }
  0xde   :  { %669 = vxpose.xlu2.b32.cont [7/16] %v668_v0, 128  ;;  %v672_v0 = vpack.i.bf16 %v529_v58, %v513_v46  ;;  %v118_v24 = vpop.xlane.xlu1 %117  ;;  %vm301_vm4 = vweird.f32 %v1341_v2  ;;  %vm302_vm5 = vweird.f32 %v1387_v8  ;;  %v294_v22 = vsel %vm1466_vm1, %v1354_v41, %v290_v45  ;;  %vm1483_vm6 = vmor %vm461_vm2, %vm462_vm3  ;;  %v120_v41 = vpop.xlane.xlu0 %119 }
  0xdf   :  { %v1426_v52 = vpop.eup %818  ;;  %v1455_v36 = vmax.f32 %v118_v24, 1e-24  ;;  %v308_v57 = vmul.f32 0.5, %v307_v31  ;;  %v531_v60 = vmul.f32 %v454_v20, %v992_v44  ;;  %v460_v35 = vmul.f32 %v1380_v6, %v459_v28  ;;  %vm1490_vm7 = vmor %vm301_vm4, %vm302_vm5 }
  0xe0   :  { %v466_v10 = vmul.f32 %v1426_v52, %v1378_v16  ;;  %v300_v2 = vmul.f32 %v1387_v8, %v299_v51  ;;  %v515_v11 = vmul.f32 %v294_v22, %v942_v19  ;;  %v1500_v17 = vmax.f32 %v120_v41, 1e-24 }
  0xe1   :  { %826 = vrsqrt.f32 %v1455_v36  ;;  %v309_v5 = vsub.f32 1.5, %v308_v57  ;;  %v464_v19 = vsel %vm1483_vm6, %v1380_v6, %v460_v35  ;;  %vm311_vm8 = vweird.f32 %v1376_v38 }
  0xe2   :  { %v467_v27 = vmul.f32 %v1426_v52, %v466_v10  ;;  %v676_v46 = vpack.i.bf16 %v531_v60, %v515_v11  ;;  %v304_v14 = vsel %vm1490_vm7, %v1387_v8, %v300_v2  ;;  %vm312_vm9 = vweird.f32 %v1419_v47 }
  0xe3   :  { %vm471_vm10 = vweird.f32 %v1378_v16  ;;  %vm472_vm11 = vweird.f32 %v1426_v52  ;;  %v516_v6 = vmul.f32 %v304_v14, %v990_v43  ;;  %v532_v38 = vmul.f32 %v464_v19, %v988_v42  ;;  %vm1524_vm12 = vmor %vm311_vm8, %vm312_vm9 }
  0xe4   :  { %v468_v26 = vmul.f32 0.5, %v467_v27  ;;  %v310_v53 = vmul.f32 %v1419_v47, %v309_v5  ;;  %vm1529_vm13 = vmor %vm471_vm10, %vm472_vm11  ;;  %vm321_vm14 = vweird.f32 %v1414_v37  ;;  %vm481_vm0 = vweird.f32 %v1417_v30 }
  0xe5   :  { %v678_v21 = vpack.i.bf16 %v532_v38, %v516_v6  ;;  %vm491_vm4 = vweird.f32 %v1449_v34  ;;  %vm331_vm6 = vweird.f32 %v1455_v36 }
  0xe6   :  { %671 = vxpose.xlu2.b32.cont [8/16] %v670_v29, 128  ;;  %v1458_v29 = vpop.eup %820  ;;  %v152_v39 = vpop.xlane.xlu1 %151  ;;  %v469_v55 = vsub.f32 1.5, %v468_v26  ;;  %v314_v63 = vsel %vm1524_vm12, %v1419_v47, %v310_v53  ;;  %vm341_vm12 = vweird.f32 %v1500_v17 }
  0xe7   :  { %v1464_v13 = vpop.eup %822  ;;  %v316_v1 = vmul.f32 %v1458_v29, %v1414_v37  ;;  %v1495_v44 = vmax.f32 %v152_v39, 1e-24  ;;  %vm322_vm15 = vweird.f32 %v1458_v29  ;;  %v517_v31 = vmul.f32 %v314_v63, %v1004_v50 }
  0xe8   :  { %v476_v3 = vmul.f32 %v1464_v13, %v1417_v30  ;;  %v1497_v32 = vpop.eup %824  ;;  %v470_v54 = vmul.f32 %v1426_v52, %v469_v55  ;;  %vm482_vm1 = vweird.f32 %v1464_v13  ;;  %vm1550_vm2 = vmor %vm321_vm14, %vm322_vm15 }
  0xe9   :  { %v317_v9 = vmul.f32 %v1458_v29, %v316_v1  ;;  %v486_v12 = vmul.f32 %v1497_v32, %v1449_v34  ;;  %828 = vrsqrt.f32 %v1495_v44  ;;  %vm483_vm3 = vmor %vm481_vm0, %vm482_vm1  ;;  %vm492_vm5 = vweird.f32 %v1497_v32 }
  0xea   :  { %v477_v33 = vmul.f32 %v1464_v13, %v476_v3  ;;  %830 = vrsqrt.f32 %v1500_v17  ;;  %v474_v10 = vsel %vm1529_vm13, %v1426_v52, %v470_v54  ;;  %vm1570_vm8 = vmor %vm491_vm4, %vm492_vm5  ;;  %vm501_vm10 = vweird.f32 %v1495_v44  ;;  %v1657_v3 = vld [vmem:[#allocation8_spill] sm:$0xff] }
  0xeb   :  { %v318_v40 = vmul.f32 0.5, %v317_v9  ;;  %v487_v24 = vmul.f32 %v1497_v32, %v486_v12  ;;  %v533_v47 = vmul.f32 %v474_v10, %v1002_v49 }
  0xec   :  { %v478_v15 = vmul.f32 0.5, %v477_v33 }
  0xed   :  { %v319_v18 = vsub.f32 1.5, %v318_v40  ;;  %v488_v62 = vmul.f32 0.5, %v487_v24  ;;  %v680_v20 = vpack.i.bf16 %v533_v47, %v517_v31 }
  0xee   :  { %673 = vxpose.xlu2.b32.cont [9/16] %v672_v0, 128  ;;  %v1502_v0 = vpop.eup %826  ;;  %v479_v7 = vsub.f32 1.5, %v478_v15 }
  0xef   :  { %v326_v8 = vmul.f32 %v1502_v0, %v1455_v36  ;;  %v1535_v42 = vpop.eup %828  ;;  %v489_v51 = vsub.f32 1.5, %v488_v62  ;;  %vm332_vm7 = vweird.f32 %v1502_v0 }
  0xf0   :  { %v831_v59 = vpop.eup %830  ;;  %v480_v37 = vmul.f32 %v1464_v13, %v479_v7  ;;  %v496_v28 = vmul.f32 %v1535_v42, %v1495_v44  ;;  %vm333_vm9 = vmor %vm331_vm6, %vm332_vm7  ;;  %vm502_vm11 = vweird.f32 %v1535_v42  ;;  %v1658_v44 = vld [vmem:[#allocation11_spill] sm:$0xff] }
  0xf1   :  { %v327_v43 = vmul.f32 %v1502_v0, %v326_v8  ;;  %v336_v30 = vmul.f32 %v831_v59, %v1500_v17  ;;  %v490_v39 = vmul.f32 %v1497_v32, %v489_v51  ;;  %vm342_vm13 = vweird.f32 %v831_v59  ;;  %vm503_vm14 = vmor %vm501_vm10, %vm502_vm11 }
  0xf2   :  { %v497_v50 = vmul.f32 %v1535_v42, %v496_v28  ;;  %v484_v22 = vsel %vm483_vm3, %v1464_v13, %v480_v37  ;;  %vm343_vm15 = vmor %vm341_vm12, %vm342_vm13 }
  0xf3   :  { %v328_v45 = vmul.f32 0.5, %v327_v43  ;;  %v337_v49 = vmul.f32 %v831_v59, %v336_v30  ;;  %v534_v1 = vmul.f32 %v484_v22, %v1016_v56  ;;  %v1656_v56 = vld [vmem:[#allocation9_spill] sm:$0xff] }
  0xf4   :  { %v498_v34 = vmul.f32 0.5, %v497_v50 }
  0xf5   :  { %v329_v27 = vsub.f32 1.5, %v328_v45  ;;  %v338_v13 = vmul.f32 0.5, %v337_v49 }
  0xf6   :  { %675 = vxpose.xlu2.b32.cont [10/16] %v674_v23, 128  ;;  %v320_v23 = vmul.f32 %v1458_v29, %v319_v18  ;;  %v499_v58 = vsub.f32 1.5, %v498_v34 }
  0xf7   :  { %v339_v36 = vsub.f32 1.5, %v338_v13 }
  0xf8   :  { %v324_v4 = vsel %vm1550_vm2, %v1458_v29, %v320_v23  ;;  %v330_v29 = vmul.f32 %v1502_v0, %v329_v27  ;;  %v500_v61 = vmul.f32 %v1535_v42, %v499_v58 }
  0xf9   :  { %v518_v57 = vmul.f32 %v324_v4, %v1000_v48  ;;  %v494_v48 = vsel %vm1570_vm8, %v1497_v32, %v490_v39  ;;  %v340_v11 = vmul.f32 %v831_v59, %v339_v36 }
  0xfa   :  { %v334_v2 = vsel %vm333_vm9, %v1502_v0, %v330_v29  ;;  %v535_v41 = vmul.f32 %v494_v48, %v1657_v3  ;;  %v504_v32 = vsel %vm503_vm14, %v1535_v42, %v500_v61  ;;  %v1659_v0 = vld [vmem:[#allocation10_spill] sm:$0xff] }
  0xfb   :  { %v682_v35 = vpack.i.bf16 %v534_v1, %v518_v57  ;;  %v519_v26 = vmul.f32 %v334_v2, %v1656_v56  ;;  %v344_v9 = vsel %vm343_vm15, %v831_v59, %v340_v11  ;;  %v536_v55 = vmul.f32 %v504_v32, %v1659_v0 }
  0xfd   :  { %v684_v5 = vpack.i.bf16 %v535_v41, %v519_v26 }
  0xfe   :  { %677 = vxpose.xlu2.b32.cont [11/16] %v676_v46, 128  ;;  %v520_v46 = vmul.f32 %v344_v9, %v1658_v44 }
 0x100   :  { %v686_v17 = vpack.i.bf16 %v536_v55, %v520_v46 }
 0x106   :  { %679 = vxpose.xlu2.b32.cont [12/16] %v678_v21, 128 }
 0x10e   :  { %681 = vxpose.xlu2.b32.cont [13/16] %v680_v20, 128 }
 0x116   :  { %683 = vxpose.xlu2.b32.cont [14/16] %v682_v35, 128 }
 0x11e   :  { %685 = vxpose.xlu2.b32.cont [15/16] %v684_v5, 128 }
 0x126   :  { %687 = vxpose.xlu2.b32.end [16/16] %v686_v17, 128 }
 0x147   :  { %v688_v33 = vpop.trf.xlu2 }
 0x148   :  { %v692_v14 = vunpack.i.h.bf16 %v688_v33  ;;  %v689_v19 = vunpack.i.l.bf16 %v688_v33 }
 0x14a   :  { %v601_v12 = vpack.c.bf16 %v692_v14, %v689_v19 }
 0x14c   :  { %617 = vst [vmem:[#allocation5] sm:$0xff] %v601_v12 }
 0x14f   :  { %v693_v8 = vpop.trf.xlu2 }
 0x150   :  { %v697_v6 = vunpack.i.h.bf16 %v693_v8  ;;  %v694_v38 = vunpack.i.l.bf16 %v693_v8 }
 0x152   :  { %v602_v53 = vpack.c.bf16 %v697_v6, %v694_v38 }
 0x154   :  { %618 = vst [vmem:[#allocation5 + $0x8] sm:$0xff] %v602_v53 }
 0x157   :  { %v698_v16 = vpop.trf.xlu2 }
 0x158   :  { %v702_v40 = vunpack.i.h.bf16 %v698_v16  ;;  %v699_v54 = vunpack.i.l.bf16 %v698_v16 }
 0x15a   :  { %v603_v15 = vpack.c.bf16 %v702_v40, %v699_v54 }
 0x15c   :  { %619 = vst [vmem:[#allocation5 + $0x10] sm:$0xff] %v603_v15 }
 0x15f   :  { %v703_v25 = vpop.trf.xlu2 }
 0x160   :  { %v707_v24 = vunpack.i.h.bf16 %v703_v25  ;;  %v704_v43 = vunpack.i.l.bf16 %v703_v25 }
 0x162   :  { %v604_v21 = vpack.c.bf16 %v707_v24, %v704_v43 }
 0x164   :  { %620 = vst [vmem:[#allocation5 + $0x18] sm:$0xff] %v604_v21 }
 0x167   :  { %v708_v42 = vpop.trf.xlu2 }
 0x168   :  { %v712_v18 = vunpack.i.h.bf16 %v708_v42  ;;  %v709_v7 = vunpack.i.l.bf16 %v708_v42 }
 0x16a   :  { %v605_v63 = vpack.c.bf16 %v712_v18, %v709_v7 }
 0x16c   :  { %621 = vst [vmem:[#allocation5 + $0x20] sm:$0xff] %v605_v63 }
 0x16f   :  { %v713_v10 = vpop.trf.xlu2 }
 0x170   :  { %v717_v59 = vunpack.i.h.bf16 %v713_v10  ;;  %v714_v62 = vunpack.i.l.bf16 %v713_v10 }
 0x172   :  { %v606_v45 = vpack.c.bf16 %v717_v59, %v714_v62 }
 0x174   :  { %622 = vst [vmem:[#allocation5 + $0x28] sm:$0xff] %v606_v45 }
 0x177   :  { %v718_v31 = vpop.trf.xlu2 }
 0x178   :  { %v722_v47 = vunpack.i.h.bf16 %v718_v31  ;;  %v719_v23 = vunpack.i.l.bf16 %v718_v31 }
 0x17a   :  { %v607_v52 = vpack.c.bf16 %v722_v47, %v719_v23 }
 0x17c   :  { %623 = vst [vmem:[#allocation5 + $0x30] sm:$0xff] %v607_v52 }
 0x17f   :  { %v723_v37 = vpop.trf.xlu2 }
 0x180   :  { %v727_v28 = vunpack.i.h.bf16 %v723_v37  ;;  %v724_v30 = vunpack.i.l.bf16 %v723_v37 }
 0x182   :  { %v608_v51 = vpack.c.bf16 %v727_v28, %v724_v30 }
 0x184   :  { %624 = vst [vmem:[#allocation5 + $0x38] sm:$0xff] %v608_v51 }
 0x187   :  { %v728_v27 = vpop.trf.xlu2 }
 0x188   :  { %v732_v20 = vunpack.i.h.bf16 %v728_v27  ;;  %v729_v50 = vunpack.i.l.bf16 %v728_v27 }
 0x18a   :  { %v609_v49 = vpack.c.bf16 %v732_v20, %v729_v50 }
 0x18c   :  { %625 = vst [vmem:[#allocation5 + $0x40] sm:$0xff] %v609_v49 }
 0x18f   :  { %v733_v4 = vpop.trf.xlu2 }
 0x190   :  { %v737_v22 = vunpack.i.h.bf16 %v733_v4  ;;  %v734_v57 = vunpack.i.l.bf16 %v733_v4 }
 0x192   :  { %v610_v1 = vpack.c.bf16 %v737_v22, %v734_v57 }
 0x194   :  { %626 = vst [vmem:[#allocation5 + $0x48] sm:$0xff] %v610_v1 }
 0x197   :  { %v738_v39 = vpop.trf.xlu2 }
 0x198   :  { %v742_v60 = vunpack.i.h.bf16 %v738_v39  ;;  %v739_v29 = vunpack.i.l.bf16 %v738_v39 }
 0x19a   :  { %v611_v34 = vpack.c.bf16 %v742_v60, %v739_v29 }
 0x19c   :  { %627 = vst [vmem:[#allocation5 + $0x50] sm:$0xff] %v611_v34 }
 0x19f   :  { %v743_v13 = vpop.trf.xlu2 }
 0x1a0   :  { %v747_v35 = vunpack.i.h.bf16 %v743_v13  ;;  %v744_v58 = vunpack.i.l.bf16 %v743_v13 }
 0x1a2   :  { %v612_v36 = vpack.c.bf16 %v747_v35, %v744_v58 }
 0x1a4   :  { %628 = vst [vmem:[#allocation5 + $0x58] sm:$0xff] %v612_v36 }
 0x1a7   :  { %v748_v2 = vpop.trf.xlu2 }
 0x1a8   :  { %v752_v48 = vunpack.i.h.bf16 %v748_v2  ;;  %v749_v56 = vunpack.i.l.bf16 %v748_v2 }
 0x1aa   :  { %v613_v26 = vpack.c.bf16 %v752_v48, %v749_v56 }
 0x1ac   :  { %629 = vst [vmem:[#allocation5 + $0x60] sm:$0xff] %v613_v26 }
 0x1af   :  { %v753_v3 = vpop.trf.xlu2 }
 0x1b0   :  { %v757_v41 = vunpack.i.h.bf16 %v753_v3  ;;  %v754_v61 = vunpack.i.l.bf16 %v753_v3 }
 0x1b2   :  { %v614_v11 = vpack.c.bf16 %v757_v41, %v754_v61 }
 0x1b4   :  { %630 = vst [vmem:[#allocation5 + $0x68] sm:$0xff] %v614_v11 }
 0x1b7   :  { %v758_v5 = vpop.trf.xlu2 }
 0x1b8   :  { %v762_v9 = vunpack.i.h.bf16 %v758_v5  ;;  %v759_v32 = vunpack.i.l.bf16 %v758_v5 }
 0x1ba   :  { %v615_v44 = vpack.c.bf16 %v762_v9, %v759_v32 }
 0x1bc   :  { %631 = vst [vmem:[#allocation5 + $0x70] sm:$0xff] %v615_v44 }
 0x1bf   :  { %v763_v46 = vpop.trf.xlu2 }
 0x1c0   :  { %v767_v0 = vunpack.i.h.bf16 %v763_v46  ;;  %v764_v55 = vunpack.i.l.bf16 %v763_v46 }
 0x1c2   :  { %v616_v17 = vpack.c.bf16 %v767_v0, %v764_v55 }
 0x1c4   :  { %632 = vst [vmem:[#allocation5 + $0x78] sm:$0xff] %v616_v17 }
 0x1c5   :  { %645 = dma.vmem_to_hbm [thread:$0]  %s638_s13, 2048, %s640_s16, [#allocation4], %s885_s11, %s885_s11, %s886_s12  }
 0x1c6   :  { %882 = dma.done.wait [#allocation4], 2048  }
 0x1c7   :  { %883 = vsyncadd [#allocation4], 4294965248 }
 0x1c8   :  { %650 = vsyncpa [#allocation3], 1 }
 0x1c9   :  { %651 = vsyncpa [#allocation4], 1 }

</bundles_post_ra>
